<compile_context>
chip_gen: v6e
topology: v6e:2x2x1
jax: 0.10.0
libtpu: 0.0.40
codegen_flags: <defaults>
</compile_context>

<pallas_src>
import functools

import jax
import jax.numpy as jnp
from jax import lax
from jax.experimental import pallas as pl
from jax.experimental.pallas import tpu as pltpu


_NEG_BIG = -1.0e30   # finite stand-in for -inf (avoids inf-inf -> NaN in rescale)


def _round_up(x, m):
    return ((x + m - 1) // m) * m


def _supcon_kernel(anchor_ref, feat_t_ref, lab_col_ref, lab_row_ref, cnt_ref,
                   out_ref, m_sc, l_sc, p_sc, *,
                   tm, tn, n_true, temperature, base_temperature):
    """One (row-tile i, column-chunk j) grid step.

    anchor_ref : [tm, D_pad]   anchor features, pre-scaled by 1/temperature
    feat_t_ref : [D_pad, tn]   transposed contrast features, column chunk
    lab_col_ref: [tm, 1]       labels of this tile's anchor rows (padding = -1)
    lab_row_ref: [1, tn]       labels of this column chunk       (padding = -1)
    cnt_ref    : [tm, 1]       precomputed positive count per anchor (f32)
    out_ref    : [tm, 1]       per-anchor loss (written at the last chunk)
    m_sc/l_sc/p_sc : [tm, 1]   running max / sum(exp) / sum(pos * logit)
    """
    i = pl.program_id(0)
    j = pl.program_id(1)

    @pl.when(j == 0)
    def _():
        m_sc[...] = jnp.full((tm, 1), _NEG_BIG, dtype=jnp.float32)
        l_sc[...] = jnp.zeros((tm, 1), dtype=jnp.float32)
        p_sc[...] = jnp.zeros((tm, 1), dtype=jnp.float32)

    # (tm, D) x (D, tn) contraction on the MXU with f32 accumulation.  The RHS
    # is already transposed in the wrapper, so no in-kernel transpose is needed.
    logits = jnp.dot(anchor_ref[...], feat_t_ref[...],
                     preferred_element_type=jnp.float32)            # [tm, tn]

    rows = i * tm + lax.broadcasted_iota(jnp.int32, (tm, 1), 0)     # anchor ids
    cols = j * tn + lax.broadcasted_iota(jnp.int32, (tm, tn), 1)    # contrast ids
    valid = (cols != rows) & (cols < n_true)     # drop self-contrast + padding
    pos = (lab_col_ref[...] == lab_row_ref[...]) & valid            # bool mask

    # Sum of raw positive logits.  The row-max shift cancels exactly in the
    # closed form:  mean_log_prob_pos = sum_pos(logits)/cnt - LSE_valid(logits).
    p_sc[...] += jnp.sum(jnp.where(pos, logits, 0.0), axis=1, keepdims=True)

    # Online logsumexp over valid columns (flash-attention style rescale).
    chunk_max = jnp.max(jnp.where(valid, logits, _NEG_BIG), axis=1, keepdims=True)
    m_old = m_sc[...]
    m_new = jnp.maximum(m_old, chunk_max)
    e = jnp.where(valid, jnp.exp(logits - m_new), 0.0)
    l_sc[...] = l_sc[...] * jnp.exp(m_old - m_new) + jnp.sum(e, axis=1,
                                                             keepdims=True)
    m_sc[...] = m_new

    @pl.when(j == pl.num_programs(1) - 1)
    def _():
        cnt = cnt_ref[...]                                           # [tm, 1]
        lse = m_sc[...] + jnp.log(jnp.maximum(l_sc[...], 1e-30))
        safe = jnp.where(cnt > 0.0, cnt, 1.0)
        mean_log_prob_pos = (p_sc[...] - cnt * lse) / safe
        out_ref[...] = (-(temperature / base_temperature)
                        * mean_log_prob_pos).astype(out_ref.dtype)


def supcon_loss(features, labels=None, mask=None,
                temperature=0.07, contrast_mode='all', base_temperature=0.07,
                matmul_dtype=jnp.bfloat16):
    """JAX/Pallas equivalent of SupConLoss.forward (contrast_mode='all').

    matmul_dtype: dtype of the MXU operands.  bf16 (default) gives ~4x MXU
    throughput and halves feature DMA; accumulation and all softmax math stay in
    float32.  Use jnp.float32 for exact parity with the reference.

    Behavioral note: anchors with zero positives contribute 0 to the mean
    (the PyTorch original would produce NaN for them).
    """
    features = jnp.asarray(features)
    if features.ndim < 3:
        raise ValueError('`features` needs to be [bsz, n_views, ...]')
    if features.ndim > 3:
        features = features.reshape(features.shape[0], features.shape[1], -1)
    bsz, n_views, d = features.shape

    if contrast_mode != 'all':
        # TODO(synk): contrast_mode='one' (anchor = view 0 only) not implemented.
        raise NotImplementedError('only contrast_mode="all" is implemented')
    if labels is not None and mask is not None:
        raise ValueError('Cannot define both `labels` and `mask`')
    if mask is not None:
        # TODO(synk): arbitrary [bsz, bsz] mask path not implemented; use `labels`.
        raise NotImplementedError('explicit `mask` path not implemented')

    if labels is None:
        labels_b = jnp.arange(bsz, dtype=jnp.int32)   # SimCLR: mask = eye(bsz)
    else:
        labels_b = jnp.asarray(labels).reshape(-1).astype(jnp.int32)
        if labels_b.shape[0] != bsz:
            raise ValueError('Num of labels does not match num of features')

    n = bsz * n_views
    d_pad = _round_up(max(d, 1), 128)     # lane/contraction dim; zero-pad is exact

    # ---- tiling ---------------------------------------------------------------
    # Row tiles: >=2 so both v7x TensorCores get work even on small batches.
    if n <= 512:
        num_row_tiles = 2 if n > 8 else 1
        tm = _round_up(-(-n // num_row_tiles), 8)
    else:
        tm = 256
        num_row_tiles = -(-n // tm)
    n_rows = num_row_tiles * tm

    # Column chunks: <= 2048 lanes so [tm, tn] f32 temporaries stay small
    # (bounded VMEM; scales to any N under v7x's 64 MiB/TC).
    num_col_tiles = -(-_round_up(n, 128) // 2048)
    tn = _round_up(-(-n // num_col_tiles), 128)
    n_cols = num_col_tiles * tn

    # ---- operand preparation (one-time XLA work) ------------------------------
    # torch.cat(torch.unbind(features, 1), 0)  ->  view-major [n, d] stacking.
    cf = jnp.transpose(features, (1, 0, 2)).reshape(n, d).astype(jnp.float32)
    cf = jnp.pad(cf, ((0, n_rows - n), (0, d_pad - d)))

    inv_t = jnp.float32(1.0 / temperature)
    anchor = (cf * inv_t).astype(matmul_dtype)                  # [n_rows, d_pad]
    # Pre-transposed contrast operand -> plain (tm,D)x(D,tn) MXU contraction.
    contrast_t = jnp.pad(cf[:n].astype(matmul_dtype).T,
                         ((0, 0), (0, n_cols - n)))             # [d_pad, n_cols]

    lab_vec = jnp.tile(labels_b, n_views)                       # label per row
    lab_col = jnp.pad(lab_vec, (0, n_rows - n),
                      constant_values=-1).reshape(n_rows, 1)
    lab_row = jnp.pad(lab_vec, (0, n_cols - n),
                      constant_values=-1).reshape(1, n_cols)

    # Positive count per anchor, computed once in XLA:
    #   n_views * |{j : label_j == label_i}| - 1   (self excluded).
    same = (labels_b[:, None] == labels_b[None, :]).astype(jnp.float32)
    cnt_b = n_views * jnp.sum(same, axis=1) - 1.0
    cnt = jnp.pad(jnp.tile(cnt_b, n_views),
                  (0, n_rows - n)).reshape(n_rows, 1).astype(jnp.float32)

    # ---- VMEM budget / cost hint ----------------------------------------------
    try:
        vmem_cap = int(pltpu.get_tpu_info().vmem_capacity_bytes)
    except Exception:
        vmem_cap = 64 * 1024 * 1024                 # conservative (v7x per-TC)
    isz = jnp.dtype(matmul_dtype).itemsize
    est = (2 * tm * d_pad * isz                     # anchor tile (double-buffered)
           + 2 * d_pad * tn * isz                   # contrast chunk (double-buffered)
           + 2 * (tn + 3 * tm) * 4                  # label / count / output blocks
           + 10 * tm * tn * 4                       # [tm, tn] f32 temporaries
           + 3 * tm * 4)                            # accumulator scratch
    vmem_limit = int(min(max(2 * est, 32 << 20), int(0.9 * vmem_cap)))

    cost = pl.CostEstimate(
        flops=2 * n_rows * n_cols * d_pad,
        transcendentals=n_rows * n_cols,
        bytes_accessed=int(n_rows * d_pad * isz
                           + num_row_tiles * n_cols * d_pad * isz
                           + n_cols * 4 + 4 * n_rows * 4))

    kernel = functools.partial(
        _supcon_kernel, tm=tm, tn=tn, n_true=n,
        temperature=float(temperature),
        base_temperature=float(base_temperature))

    grid_spec = pltpu.PrefetchScalarGridSpec(
        num_scalar_prefetch=0,
        grid=(num_row_tiles, num_col_tiles),
        in_specs=[
            pl.BlockSpec((tm, d_pad), lambda i, j: (i, 0)),   # anchors (pre-scaled)
            pl.BlockSpec((d_pad, tn), lambda i, j: (0, j)),   # contrast^T chunk
            pl.BlockSpec((tm, 1), lambda i, j: (i, 0)),       # anchor labels
            pl.BlockSpec((1, tn), lambda i, j: (0, j)),       # contrast labels
            pl.BlockSpec((tm, 1), lambda i, j: (i, 0)),       # positive counts
        ],
        out_specs=pl.BlockSpec((tm, 1), lambda i, j: (i, 0)),
        scratch_shapes=[pltpu.VMEM((tm, 1), jnp.float32),
                        pltpu.VMEM((tm, 1), jnp.float32),
                        pltpu.VMEM((tm, 1), jnp.float32)],
    )

    per_anchor = pl.pallas_call(
        kernel,
        out_shape=jax.ShapeDtypeStruct((n_rows, 1), jnp.float32),
        grid_spec=grid_spec,
        compiler_params=pltpu.CompilerParams(
            dimension_semantics=("parallel", "arbitrary"),
            vmem_limit_bytes=vmem_limit),
        cost_estimate=cost,
    )(anchor, contrast_t, lab_col, lab_row, cnt)

    # loss.view(anchor_count, batch_size).mean() == mean over all real anchors.
    return jnp.mean(per_anchor[:n, 0])


def _supcon_loss_ref(features, labels=None, temperature=0.07, base_temperature=0.07):
    """Pure-JAX mirror of the PyTorch module (contrast_mode='all') for checking."""
    bsz, n_views, d = features.shape
    if labels is None:
        mask_b = jnp.eye(bsz, dtype=jnp.float32)
    else:
        labels = labels.reshape(-1, 1)
        mask_b = (labels == labels.T).astype(jnp.float32)
    a = jnp.transpose(features, (1, 0, 2)).reshape(bsz * n_views, d)
    n = bsz * n_views
    logits = (a @ a.T) / temperature
    logits = logits - jnp.max(logits, axis=1, keepdims=True)
    logits_mask = 1.0 - jnp.eye(n, dtype=jnp.float32)
    mask = jnp.tile(mask_b, (n_views, n_views)) * logits_mask
    exp_logits = jnp.exp(logits) * logits_mask
    log_prob = logits - jnp.log(jnp.sum(exp_logits, axis=1, keepdims=True))
    mean_log_prob_pos = jnp.sum(mask * log_prob, axis=1) / jnp.sum(mask, axis=1)
    return jnp.mean(-(temperature / base_temperature) * mean_log_prob_pos)


if __name__ == "__main__":
    key = jax.random.PRNGKey(0)
    k_feat, k_lab = jax.random.split(key)

    bsz, n_views, d = 8, 2, 32
    feats = jax.random.normal(k_feat, (bsz, n_views, d), dtype=jnp.float32)
    # L2-normalize along the feature dim (standard for SupCon inputs).
    feats = feats / jnp.linalg.norm(feats, axis=-1, keepdims=True)
    labels = jax.random.randint(k_lab, (bsz,), 0, 4)

    ref = jax.block_until_ready(_supcon_loss_ref(feats, labels))

    # Exact-parity path: f32 MXU operands.
    loss_f32 = jax.block_until_ready(
        supcon_loss(feats, labels=labels, matmul_dtype=jnp.float32))
    assert jnp.allclose(loss_f32, ref, rtol=1e-3, atol=1e-5), (loss_f32, ref)

    # Default fast path: bf16 MXU operands, f32 accumulation / softmax.
    loss_bf16 = jax.block_until_ready(supcon_loss(feats, labels=labels))
    assert jnp.allclose(loss_bf16, ref, rtol=5e-2, atol=5e-2), (loss_bf16, ref)

    # Unsupervised (SimCLR) path: labels=None, mask=None.
    ref_u = jax.block_until_ready(_supcon_loss_ref(feats, None))
    loss_u = jax.block_until_ready(
        supcon_loss(feats, matmul_dtype=jnp.float32))
    assert jnp.allclose(loss_u, ref_u, rtol=1e-3, atol=1e-5), (loss_u, ref_u)

    print("KERNEL_OK")
</pallas_src>

<mosaic_0001>
module attributes {stable_mosaic.version = 11 : i64} {
  func.func @_supcon_kernel(%arg0: i32, %arg1: i32, %arg2: memref<8x128xf32, #tpu.memory_space<vmem>>, %arg3: memref<128x128xf32, #tpu.memory_space<vmem>>, %arg4: memref<8x1xi32, #tpu.memory_space<vmem>>, %arg5: memref<1x128xi32, #tpu.memory_space<vmem>>, %arg6: memref<8x1xf32, #tpu.memory_space<vmem>>, %arg7: memref<8x1xf32, #tpu.memory_space<vmem>>, %arg8: memref<8x1xf32, #tpu.memory_space<vmem>>, %arg9: memref<8x1xf32, #tpu.memory_space<vmem>>, %arg10: memref<8x1xf32, #tpu.memory_space<vmem>>) attributes {dimension_semantics = [#tpu.dimension_semantics<parallel>, #tpu.dimension_semantics<arbitrary>], iteration_bounds = array<i64: 2, 1>, scalar_prefetch = 0 : i64, scratch_operands = 3 : i64, tpu.core_type = #tpu.core_type<tc>, window_params = [{transform_indices = @transform_0, window_bounds = array<i64: 8, 128>}, {transform_indices = @transform_1, window_bounds = array<i64: 128, 128>}, {transform_indices = @transform_2, window_bounds = array<i64: 8, 1>}, {transform_indices = @transform_3, window_bounds = array<i64: 1, 128>}, {transform_indices = @transform_4, window_bounds = array<i64: 8, 1>}, {transform_indices = @transform_5, window_bounds = array<i64: 8, 1>}]} {
    %c0_i32 = arith.constant 0 : i32
    %0 = arith.cmpi eq, %arg1, %c0_i32 : i32
    %1 = arith.extui %0 : i1 to i32
    %c0_i32_0 = arith.constant 0 : i32
    %2 = arith.cmpi ne, %1, %c0_i32_0 : i32
    scf.if %2 {
      %cst_28 = arith.constant -1.000000e+30 : f32
      %55 = vector.broadcast %cst_28 : f32 to vector<8x1xf32>
      %c0_29 = arith.constant 0 : index
      %c0_30 = arith.constant 0 : index
      %56 = vector.load %arg8[%c0_29, %c0_30] : memref<8x1xf32, #tpu.memory_space<vmem>>, vector<8x1xf32>
      tpu.vector_store %arg8[%c0_29, %c0_30], %55 {strides = array<i32>} : memref<8x1xf32, #tpu.memory_space<vmem>>, vector<8x1xf32>,
      %cst_31 = arith.constant 0.000000e+00 : f32
      %57 = vector.broadcast %cst_31 : f32 to vector<8x1xf32>
      %c0_32 = arith.constant 0 : index
      %c0_33 = arith.constant 0 : index
      %58 = vector.load %arg9[%c0_32, %c0_33] : memref<8x1xf32, #tpu.memory_space<vmem>>, vector<8x1xf32>
      tpu.vector_store %arg9[%c0_32, %c0_33], %57 {strides = array<i32>} : memref<8x1xf32, #tpu.memory_space<vmem>>, vector<8x1xf32>,
      %cst_34 = arith.constant 0.000000e+00 : f32
      %59 = vector.broadcast %cst_34 : f32 to vector<8x1xf32>
      %c0_35 = arith.constant 0 : index
      %c0_36 = arith.constant 0 : index
      %60 = vector.load %arg10[%c0_35, %c0_36] : memref<8x1xf32, #tpu.memory_space<vmem>>, vector<8x1xf32>
      tpu.vector_store %arg10[%c0_35, %c0_36], %59 {strides = array<i32>} : memref<8x1xf32, #tpu.memory_space<vmem>>, vector<8x1xf32>,
    } else {
    }
    %c0 = arith.constant 0 : index
    %c0_1 = arith.constant 0 : index
    %3 = vector.load %arg2[%c0, %c0_1] : memref<8x128xf32, #tpu.memory_space<vmem>>, vector<8x128xf32>
    %c0_2 = arith.constant 0 : index
    %c0_3 = arith.constant 0 : index
    %4 = vector.load %arg3[%c0_2, %c0_3] : memref<128x128xf32, #tpu.memory_space<vmem>>, vector<128x128xf32>
    %cst = arith.constant dense<0.000000e+00> : vector<8x128xf32>
    %5 = tpu.matmul %3, %4, %cst {dimension_numbers = #tpu.dot_dimension_numbers<[1], [0], [0], [1], [0, 0, 1, 1], [], []>} : vector<8x128xf32>, vector<128x128xf32>, vector<8x128xf32> -> vector<8x128xf32>
    %c8_i32 = arith.constant 8 : i32
    %6 = arith.muli %arg0, %c8_i32 : i32
    %7 = tpu.iota {dimensions = array<i32: 0>} : vector<8x1xi32>
    %8 = vector.broadcast %6 : i32 to vector<8x1xi32>
    %9 = arith.addi %8, %7 : vector<8x1xi32>
    %c128_i32 = arith.constant 128 : i32
    %10 = arith.muli %arg1, %c128_i32 : i32
    %11 = tpu.iota {dimensions = array<i32: 1>} : vector<8x128xi32>
    %12 = vector.broadcast %10 : i32 to vector<8x128xi32>
    %13 = arith.addi %12, %11 : vector<8x128xi32>
    %14 = vector.broadcast %9 : vector<8x1xi32> to vector<8x128xi32>
    %15 = arith.cmpi ne, %13, %14 : vector<8x128xi32>
    %c16_i32 = arith.constant 16 : i32
    %16 = vector.broadcast %c16_i32 : i32 to vector<8x128xi32>
    %17 = arith.cmpi slt, %13, %16 : vector<8x128xi32>
    %18 = arith.andi %15, %17 : vector<8x128xi1>
    %c0_4 = arith.constant 0 : index
    %c0_5 = arith.constant 0 : index
    %19 = vector.load %arg4[%c0_4, %c0_5] : memref<8x1xi32, #tpu.memory_space<vmem>>, vector<8x1xi32>
    %c0_6 = arith.constant 0 : index
    %c0_7 = arith.constant 0 : index
    %20 = vector.load %arg5[%c0_6, %c0_7] : memref<1x128xi32, #tpu.memory_space<vmem>>, vector<1x128xi32>
    %21 = vector.broadcast %19 : vector<8x1xi32> to vector<8x128xi32>
    %22 = vector.broadcast %20 : vector<1x128xi32> to vector<8x128xi32>
    %23 = arith.cmpi eq, %21, %22 : vector<8x128xi32>
    %24 = arith.andi %23, %18 : vector<8x128xi1>
    %c0_8 = arith.constant 0 : index
    %c0_9 = arith.constant 0 : index
    %25 = vector.load %arg10[%c0_8, %c0_9] : memref<8x1xf32, #tpu.memory_space<vmem>>, vector<8x1xf32>
    %cst_10 = arith.constant 0.000000e+00 : f32
    %26 = vector.broadcast %cst_10 : f32 to vector<8x128xf32>
    %27 = arith.select %24, %5, %26 : vector<8x128xi1>, vector<8x128xf32>
    %cst_11 = arith.constant dense<0.000000e+00> : vector<8xf32>
    %28 = vector.multi_reduction <add>, %27, %cst_11 [1] : vector<8x128xf32> to vector<8xf32>
    %29 = vector.shape_cast %28 : vector<8xf32> to vector<8x1xf32>
    %30 = arith.addf %25, %29 : vector<8x1xf32>
    %c0_12 = arith.constant 0 : index
    %c0_13 = arith.constant 0 : index
    %31 = vector.load %arg10[%c0_12, %c0_13] : memref<8x1xf32, #tpu.memory_space<vmem>>, vector<8x1xf32>
    tpu.vector_store %arg10[%c0_12, %c0_13], %30 {strides = array<i32>} : memref<8x1xf32, #tpu.memory_space<vmem>>, vector<8x1xf32>,
    %cst_14 = arith.constant -1.000000e+30 : f32
    %32 = vector.broadcast %cst_14 : f32 to vector<8x128xf32>
    %33 = arith.select %18, %5, %32 : vector<8x128xi1>, vector<8x128xf32>
    %cst_15 = arith.constant dense<0xFF800000> : vector<8xf32>
    %34 = vector.multi_reduction <maximumf>, %33, %cst_15 [1] : vector<8x128xf32> to vector<8xf32>
    %35 = vector.shape_cast %34 : vector<8xf32> to vector<8x1xf32>
    %c0_16 = arith.constant 0 : index
    %c0_17 = arith.constant 0 : index
    %36 = vector.load %arg8[%c0_16, %c0_17] : memref<8x1xf32, #tpu.memory_space<vmem>>, vector<8x1xf32>
    %37 = arith.maximumf %36, %35 : vector<8x1xf32>
    %38 = vector.broadcast %37 : vector<8x1xf32> to vector<8x128xf32>
    %39 = arith.subf %5, %38 : vector<8x128xf32>
    %40 = math.exp %39 : vector<8x128xf32>
    %cst_18 = arith.constant 0.000000e+00 : f32
    %41 = vector.broadcast %cst_18 : f32 to vector<8x128xf32>
    %42 = arith.select %18, %40, %41 : vector<8x128xi1>, vector<8x128xf32>
    %c0_19 = arith.constant 0 : index
    %c0_20 = arith.constant 0 : index
    %43 = vector.load %arg9[%c0_19, %c0_20] : memref<8x1xf32, #tpu.memory_space<vmem>>, vector<8x1xf32>
    %44 = arith.subf %36, %37 : vector<8x1xf32>
    %45 = math.exp %44 : vector<8x1xf32>
    %46 = arith.mulf %43, %45 : vector<8x1xf32>
    %cst_21 = arith.constant dense<0.000000e+00> : vector<8xf32>
    %47 = vector.multi_reduction <add>, %42, %cst_21 [1] : vector<8x128xf32> to vector<8xf32>
    %48 = vector.shape_cast %47 : vector<8xf32> to vector<8x1xf32>
    %49 = arith.addf %46, %48 : vector<8x1xf32>
    %c0_22 = arith.constant 0 : index
    %c0_23 = arith.constant 0 : index
    %50 = vector.load %arg9[%c0_22, %c0_23] : memref<8x1xf32, #tpu.memory_space<vmem>>, vector<8x1xf32>
    tpu.vector_store %arg9[%c0_22, %c0_23], %49 {strides = array<i32>} : memref<8x1xf32, #tpu.memory_space<vmem>>, vector<8x1xf32>,
    %c0_24 = arith.constant 0 : index
    %c0_25 = arith.constant 0 : index
    %51 = vector.load %arg8[%c0_24, %c0_25] : memref<8x1xf32, #tpu.memory_space<vmem>>, vector<8x1xf32>
    tpu.vector_store %arg8[%c0_24, %c0_25], %37 {strides = array<i32>} : memref<8x1xf32, #tpu.memory_space<vmem>>, vector<8x1xf32>,
    %c0_i32_26 = arith.constant 0 : i32
    %52 = arith.cmpi eq, %arg1, %c0_i32_26 : i32
    %53 = arith.extui %52 : i1 to i32
    %c0_i32_27 = arith.constant 0 : i32
    %54 = arith.cmpi ne, %53, %c0_i32_27 : i32
    scf.if %54 {
      %c0_28 = arith.constant 0 : index
      %c0_29 = arith.constant 0 : index
      %55 = vector.load %arg6[%c0_28, %c0_29] : memref<8x1xf32, #tpu.memory_space<vmem>>, vector<8x1xf32>
      %c0_30 = arith.constant 0 : index
      %c0_31 = arith.constant 0 : index
      %56 = vector.load %arg8[%c0_30, %c0_31] : memref<8x1xf32, #tpu.memory_space<vmem>>, vector<8x1xf32>
      %c0_32 = arith.constant 0 : index
      %c0_33 = arith.constant 0 : index
      %57 = vector.load %arg9[%c0_32, %c0_33] : memref<8x1xf32, #tpu.memory_space<vmem>>, vector<8x1xf32>
      %cst_34 = arith.constant 1.000000e-30 : f32
      %58 = vector.broadcast %cst_34 : f32 to vector<8x1xf32>
      %59 = arith.maximumf %57, %58 : vector<8x1xf32>
      %60 = math.log %59 : vector<8x1xf32>
      %61 = arith.addf %56, %60 : vector<8x1xf32>
      %cst_35 = arith.constant 0.000000e+00 : f32
      %62 = vector.broadcast %cst_35 : f32 to vector<8x1xf32>
      %63 = arith.cmpf ogt, %55, %62 : vector<8x1xf32>
      %cst_36 = arith.constant 1.000000e+00 : f32
      %64 = vector.broadcast %cst_36 : f32 to vector<8x1xf32>
      %65 = arith.select %63, %55, %64 : vector<8x1xi1>, vector<8x1xf32>
      %c0_37 = arith.constant 0 : index
      %c0_38 = arith.constant 0 : index
      %66 = vector.load %arg10[%c0_37, %c0_38] : memref<8x1xf32, #tpu.memory_space<vmem>>, vector<8x1xf32>
      %67 = arith.mulf %55, %61 : vector<8x1xf32>
      %68 = arith.subf %66, %67 : vector<8x1xf32>
      %69 = arith.divf %68, %65 : vector<8x1xf32>
      %cst_39 = arith.constant -1.000000e+00 : f32
      %70 = vector.broadcast %cst_39 : f32 to vector<8x1xf32>
      %71 = arith.mulf %70, %69 : vector<8x1xf32>
      %c0_40 = arith.constant 0 : index
      %c0_41 = arith.constant 0 : index
      %72 = vector.load %arg7[%c0_40, %c0_41] : memref<8x1xf32, #tpu.memory_space<vmem>>, vector<8x1xf32>
      tpu.vector_store %arg7[%c0_40, %c0_41], %71 {strides = array<i32>} : memref<8x1xf32, #tpu.memory_space<vmem>>, vector<8x1xf32>,
    } else {
    }
    return
  }
  func.func @transform_0(%arg0: i32, %arg1: i32) -> (i32, i32) {
    %c0_i32 = arith.constant 0 : i32
    %c0_i32_0 = arith.constant 0 : i32
    return %arg0, %c0_i32 : i32, i32
  }
  func.func @transform_1(%arg0: i32, %arg1: i32) -> (i32, i32) {
    %c0_i32 = arith.constant 0 : i32
    %c0_i32_0 = arith.constant 0 : i32
    return %c0_i32, %arg1 : i32, i32
  }
  func.func @transform_2(%arg0: i32, %arg1: i32) -> (i32, i32) {
    %c0_i32 = arith.constant 0 : i32
    %c0_i32_0 = arith.constant 0 : i32
    return %arg0, %c0_i32 : i32, i32
  }
  func.func @transform_3(%arg0: i32, %arg1: i32) -> (i32, i32) {
    %c0_i32 = arith.constant 0 : i32
    %c0_i32_0 = arith.constant 0 : i32
    return %c0_i32, %arg1 : i32, i32
  }
  func.func @transform_4(%arg0: i32, %arg1: i32) -> (i32, i32) {
    %c0_i32 = arith.constant 0 : i32
    %c0_i32_0 = arith.constant 0 : i32
    return %arg0, %c0_i32 : i32, i32
  }
  func.func @transform_5(%arg0: i32, %arg1: i32) -> (i32, i32) {
    %c0_i32 = arith.constant 0 : i32
    %c0_i32_0 = arith.constant 0 : i32
    return %arg0, %c0_i32 : i32, i32
  }
}

</mosaic_0001>

<bundles_post_ra>
// kernel: tpu_custom_call.1
= control target key start
LH: loop header
LB: loop body
LE: loop exit
PB: predicated region body
PF: predicated region fallthrough
CT: control target
= control target key end

     0   :  { %10 = vsyncpa [#allocation6], 0  ;;  %s793_s18 = smov 0   ;;  %s795_s19 = smov 0   ;;  %s904_s0 = inlined_call_operand.vmem [shape: f32[16,128], index: 0, kind: input, shape index: {}]   ;;  %s905_s1 = inlined_call_operand.hbm [shape: f32[128,128], index: 1, kind: input, shape index: {}]   ;;  %s906_s2 = inlined_call_operand.vmem [shape: s32[16,1], index: 2, kind: input, shape index: {}]   ;;  %s907_s3 = inlined_call_operand.vmem [shape: s32[1,128], index: 3, kind: input, shape index: {}]   ;;  %s908_s4 = inlined_call_operand.vmem [shape: f32[16,1], index: 4, kind: input, shape index: {}]   ;;  %s909_s5 = inlined_call_operand.vmem [shape: f32[16,1], index: 5, kind: output, shape index: {}]  }
   0x1   :  { %s797_s20 = smov 0  }
   0x2 LB: > { %s583_s21 = sadd.s32 4294967295, %s754_s20   ;;  %s28_s22 = sadd.s32 1, %s750_s19  ;;  %s754_s20 = sphi %s797_s20, %s16_s20   ;;  %s750_s19 = sphi %s795_s19, %s915_s19   ;;  %s746_s18 = sphi %s793_s18, %s914_s18  }
   0x3   : > { %p30_p0 = scmp.ge.s32.totalorder %s28_s22, 2  ;;  %p585_p1 = scmp.ge.s32.totalorder %s754_s20, 1 }
   0x4   : > { %p189_p2 = scmp.lt.s32.totalorder %s754_s20, 3  ;;  %p818_p4 = scmp.eq.s32.totalorder %s583_s21, 0 }
   0x5   : > { %s917_s22 = smov (%p30_p0, %s28_s22), 0  ;;  %s756_s25 = smov [#allocation5]  }
   0x6   : > { %p814_p3 = pnand %p585_p1, %p189_p2  ;;  %s203_s26 = sshll.u32 %s756_s25, 4  ;;  %s204_s26 = int_to_ptr.vmem [resolvable:$true] %s203_s26 }
   0x7   : > { %s713_s27 = scalar_lea.vmem %s204_s26, 2048  ;;  %p721_p11 = scmp.lt.s32.totalorder %s204_s26, %s204_s26 }
   0x8   : > { %p655_p5 = pneg %p814_p3  ;;  %p714_p8 = scmp.ne.s32.totalorder %s204_s26, %s713_s27 }
   0x9   : > { %p722_p12 = scmp.lt.s32.totalorder %s713_s27, %s713_s27 }
   0xa   : > { %p656_p6 = pnand %p818_p4, %p655_p5 }
   0xb   : > { %p723_p13 = por %p722_p12, %p721_p11 }
   0xc   : > { %p704_p7 = pneg %p656_p6 }
   0xe   : > { %p716_p9 = pnand %p714_p8, %p704_p7 }
  0x10   : > { %p717_p10 = pneg %p716_p9 }
  0x12   : > { %p724_p0 = pnand %p723_p13, %p717_p10 }
  0x14   : > { %727 = shalt.err (!%p724_p0)
}
  0x15   : > { %s757_s28 = smov 128   ;;  %s758_s29 = smov 8  }
  0x16   : > { %658 = dma.hbm_to_vmem [thread:$0]  (!%p656_p6), %s905_s1, 2048, %s204_s26, [#allocation6], %s757_s28, %s757_s28, %s758_s29  }
  0x17   : > { %246 = sbr.rel (%p814_p3) target bundleno = 717 (0x2cd), region = 40 }
  0x1c   : > { %741 = dma.done.wait (%p818_p4), [#allocation6], 2048  }
  0x1d   : > { %743 = vsyncadd (%p818_p4), [#allocation6], 4294965248  ;;  %v759_v0 = vmov 0.0   ;;  %vm760_vm0 = vmmov 0   ;;  %p283_p1 = scmp.lt.s32.totalorder %s746_s18, 1  ;;  %v761_v1 = vmov 0   ;;  %v398_v21 = vlaneseq }
  0x1e   : > { %616 = vmatprep.subr.mxu0 %v759_v0  ;;  %648 = vmatprep.mubr.msk.f32.mxu0 %vm760_vm0, %v759_v0  ;;  %v326_v2 = vld [vmem:[#allocation5 + $0x78] sm:$0xff]  ;;  %v325_v3 = vld [vmem:[#allocation5 + $0x70] sm:$0xff]  ;;  %v324_v4 = vld [vmem:[#allocation5 + $0x68] sm:$0xff]  ;;  %vm306_vm1 = vcmask 7168   ;;  %v762_v20 = vmov -1e+30  }
  0x1f   : > { %693 = vset.pattern.permute.xlu1 %v761_v1  ;;  %692 = vset.pattern.permute.xlu0 %v761_v1  ;;  %s284_s7 = scalar_select %p283_p1, %s746_s18, 1  ;;  %v323_v5 = vld [vmem:[#allocation5 + $0x60] sm:$0xff]  ;;  %v322_v6 = vld [vmem:[#allocation5 + $0x58] sm:$0xff]  ;;  %v321_v8 = vld [vmem:[#allocation5 + $0x50] sm:$0xff]  ;;  %307 = vst.msk [vmem:[#allocation2] sm:$0xff] %vm306_vm1, %v762_v20  ;;  %v399_v22 = vshrl.u32 %v398_v21, 7 }
  0x20   : > { %617 = vmatpush3.msra.mxu0 %v326_v2  ;;  %v320_v9 = vld [vmem:[#allocation5 + $0x48] sm:$0xff]  ;;  %v319_v10 = vld [vmem:[#allocation5 + $0x40] sm:$0xff]  ;;  %v318_v11 = vld [vmem:[#allocation5 + $0x38] sm:$0xff]  ;;  %308 = vst.msk [vmem:[#allocation3] sm:$0xff] %vm306_vm1, %v759_v0  ;;  %s595_s15 = sshll.u32 %s746_s18, 3  ;;  %v404_v25 = vand.u32 127, %v398_v21 }
  0x21   : > { %618 = vmatprep.subr.mxu0 %v759_v0  ;;  %s840_s8 = sshll.u32 %s284_s7, 3  ;;  %v317_v12 = vld [vmem:[#allocation5 + $0x30] sm:$0xff]  ;;  %v316_v13 = vld [vmem:[#allocation5 + $0x28] sm:$0xff]  ;;  %v315_v14 = vld [vmem:[#allocation5 + $0x20] sm:$0xff]  ;;  %309 = vst.msk [vmem:[#allocation4] sm:$0xff] %vm306_vm1, %v759_v0  ;;  %v400_v23 = vstv %s595_s15 }
  0x22   : > { %619 = vmatpush3.msra.mxu0 %v325_v3  ;;  %s290_s11 = scalar_lea.vmem %s906_s2, %s840_s8  ;;  %v314_v15 = vld [vmem:[#allocation5 + $0x18] sm:$0xff]  ;;  %v313_v16 = vld [vmem:[#allocation5 + $0x10] sm:$0xff]  ;;  %v312_v17 = vld [vmem:[#allocation5 + $0x8] sm:$0xff]  ;;  %s286_s14 = scalar_lea.vmem %s904_s0, %s840_s8  ;;  %v401_v24 = vadd.s32 %v400_v23, %v399_v22  ;;  %vm408_vm3 = vcmp.lt.s32.totalorder %v404_v25, 16 }
  0x23   : > { %620 = vmatprep.subr.mxu0 %v759_v0  ;;  %v410_v7 = vld [vmem:[%s290_s11] sm:$0xff]  ;;  %v311_v18 = vld [vmem:[#allocation5] sm:$0xff]  ;;  %s297_s23 = scalar_lea.vmem %s908_s4, %s840_s8  ;;  %s301_s26 = scalar_lea.vmem %s909_s5, %s840_s8 }
  0x24   : > { %621 = vmatpush3.msra.mxu0 %v324_v4  ;;  %413 = vperm.xlu1 %693, %v410_v7   ;;  %v310_v19 = vld [vmem:[%s286_s14] sm:$0xff]  ;;  %vm407_vm2 = vcmp.ne.s32.totalorder %v404_v25, %v401_v24 }
  0x25   : > { %622 = vmatprep.subr.mxu0 %v759_v0  ;;  %vm870_vm4 = vmand %vm407_vm2, %vm408_vm3  ;;  %v596_v37 = vld [vmem:[%s907_s3] ss:$0 sm:$0xff] }
  0x26   : > { %623 = vmatpush3.msra.mxu0 %v323_v5  ;;  %v431_v30 = vld [vmem:[#allocation2] sm:$0xff] }
  0x27   : > { %624 = vmatprep.subr.mxu0 %v759_v0  ;;  %v442_v44 = vld [vmem:[#allocation3] sm:$0xff]  ;;  %v455_v51 = vld [vmem:[%s297_s23] sm:$0xff] }
  0x28   : > { %625 = vmatpush3.msra.mxu0 %v322_v6  ;;  %v421_v48 = vld [vmem:[#allocation4] sm:$0xff]  ;;  %vm462_vm7 = vcmp.gt.f32.partialorder %v455_v51, 0.0 }
  0x29   : > { %626 = vmatprep.subr.mxu0 %v759_v0  ;;  %v463_v54 = vsel %vm462_vm7, %v455_v51, 1.0 }
  0x2a   : > { %627 = vmatpush3.msra.mxu0 %v321_v8 }
  0x2b   : > { %628 = vmatprep.subr.mxu0 %v759_v0 }
  0x2c   : > { %629 = vmatpush3.msra.mxu0 %v320_v9 }
  0x2d   : > { %630 = vmatprep.subr.mxu0 %v759_v0 }
  0x2e   : > { %631 = vmatpush3.msra.mxu0 %v319_v10 }
  0x2f   : > { %632 = vmatprep.subr.mxu0 %v759_v0 }
  0x30   : > { %633 = vmatpush3.msra.mxu0 %v318_v11 }
  0x31   : > { %634 = vmatprep.subr.mxu0 %v759_v0 }
  0x32   : > { %635 = vmatpush3.msra.mxu0 %v317_v12 }
  0x33   : > { %636 = vmatprep.subr.mxu0 %v759_v0 }
  0x34   : > { %637 = vmatpush3.msra.mxu0 %v316_v13 }
  0x35   : > { %638 = vmatprep.subr.mxu0 %v759_v0 }
  0x36   : > { %639 = vmatpush3.msra.mxu0 %v315_v14 }
  0x37   : > { %640 = vmatprep.subr.mxu0 %v759_v0 }
  0x38   : > { %641 = vmatpush3.msra.mxu0 %v314_v15 }
  0x39   : > { %642 = vmatprep.subr.mxu0 %v759_v0 }
  0x3a   : > { %643 = vmatpush3.msra.mxu0 %v313_v16 }
  0x3b   : > { %644 = vmatprep.subr.mxu0 %v759_v0 }
  0x3c   : > { %645 = vmatpush3.msra.mxu0 %v312_v17 }
  0x3d   : > { %646 = vmatprep.subr.mxu0 %v759_v0 }
  0x3e   : > { %647 = vmatpush3.msra.mxu0 %v311_v18 }
  0x3f   : > { %649 = vmatmul.mubr.f32.vlgmr.msra.gmra.mxu0 %v310_v19 }
  0x9f   : > { %v414_v38 = vpop.permute.xlu1 %413 }
  0xa0   : > { %vm419_vm5 = vcmp.eq.s32.totalorder %v414_v38, %v596_v37 }
  0xa1   : > { %vm420_vm6 = vmand %vm419_vm5, %vm870_vm4 }
  0xff   : > { %v393_v27 = vpop.f32.mrf.mxu0 }
 0x100   : > { %v428_v28 = vsel %vm870_vm4, %v393_v27, -1e+30  ;;  %v422_v41 = vsel %vm420_vm6, %v393_v27, 0.0 }
 0x101   : > { %429 = vmax.xlane.f32.xlu0 %v428_v28  ;;  %v650_v29 = vpop.f32.mrf.mxu0 }
 0x18a   : > { %v430_v31 = vpop.xlane.xlu0 %429 }
 0x18b   : > { %v432_v32 = vmax.f32 %v431_v30, %v430_v31 }
 0x18d   : > { %v443_v33 = vsub.f32 %v431_v30, %v432_v32  ;;  %451 = vst.msk [vmem:[#allocation2] sm:$0xff] %vm306_vm1, %v432_v32  ;;  %435 = vperm.xlu0 %692, %v432_v32  }
 0x18f   : > { %v444_v42 = vmul.f32 1.442695, %v443_v33 }
 0x194   : > { %v456_v57 = vld [vmem:[#allocation2] sm:$0xff] }
 0x208   : > { %v436_v34 = vpop.permute.xlu0 %435 }
 0x209   : > { %v438_v35 = vsub.f32 %v393_v27, %v436_v34 }
 0x20b   : > { %v439_v36 = vmul.f32 1.442695, %v438_v35 }
 0x20d   : > { %694 = vpow2.f32 %v439_v36 }
 0x20e   : > { %696 = vpow2.f32 %v444_v42 }
 0x21a   : > { %v695_v39 = vpop.eup %694 }
 0x21b   : > { %v441_v40 = vsel %vm870_vm4, %v695_v39, 0.0  ;;  %v697_v43 = vpop.eup %696 }
 0x21c   : > { %447 = vadd.xlane.f32.xlu1 %v441_v40  ;;  %v446_v45 = vmul.f32 %v697_v43, %v442_v44 }
 0x220   : > { %423 = vadd.xlane.f32.xlu1 %v422_v41 }
 0x2a5   : > { %v448_v46 = vpop.xlane.xlu1 %447 }
 0x2a6   : > { %v449_v47 = vadd.f32 %v448_v46, %v446_v45 }
 0x2a8   : > { %450 = vst.msk [vmem:[#allocation3] sm:$0xff] %vm306_vm1, %v449_v47 }
 0x2a9   : > { %v424_v49 = vpop.xlane.xlu1 %423 }
 0x2aa   : > { %v425_v50 = vadd.f32 %v424_v49, %v421_v48 }
 0x2ac   : > { %427 = vst.msk [vmem:[#allocation4] sm:$0xff] %vm306_vm1, %v425_v50 }
 0x2af   : > { %v457_v52 = vld [vmem:[#allocation3] sm:$0xff] }
 0x2b0   : > { %v458_v53 = vmax.f32 %v457_v52, 1e-30 }
 0x2b2   : > { %698 = vlog2.f32 %v458_v53 }
 0x2b3   : > { %700 = vrcp.f32 %v463_v54  ;;  %v464_v61 = vld [vmem:[#allocation4] sm:$0xff] }
 0x2bf   : > { %v699_v55 = vpop.eup %698 }
 0x2c0   : > { %v460_v56 = vmul.f32 0.6931472, %v699_v55  ;;  %v701_v60 = vpop.eup %700 }
 0x2c2   : > { %v461_v58 = vadd.f32 %v460_v56, %v456_v57 }
 0x2c4   : > { %v465_v59 = vmul.f32 %v461_v58, %v455_v51 }
 0x2c6   : > { %v466_v62 = vsub.f32 %v464_v61, %v465_v59 }
 0x2c8   : > { %v468_v63 = vmul.f32 %v701_v60, %v466_v62 }
 0x2ca   : > { %v469_v0 = vmul.f32 -1.0, %v468_v63 }
 0x2cc   : > { %470 = vst.msk [vmem:[%s301_s26] sm:$0xff] %vm306_vm1, %v469_v0 }
 0x2cd PF: > { %s16_s20 = sadd.s32 1, %s754_s20   ;;  %s914_s18 = smov %s750_s19 }
 0x2ce   : > { %p13_p2 = scmp.ge.s32.totalorder %s16_s20, 4   ;;  %s915_s19 = smov %s917_s22 }
 0x2d0   :  { %15 = sbr.rel (!%p13_p2) target bundleno = 2 (0x2), region = 93 }
 0x2d5   :  { %490 = vsyncpa [#allocation6], 1 }
 0x2d6   :  { %492 = vsyncpa [#allocation6 + $0x1], 1 }

</bundles_post_ra>
